<compile_context>
chip_gen: v7x
topology: tpu7x:2x2x1
jax: 0.10.0
libtpu: 0.0.40
codegen_flags: <defaults>
</compile_context>

<pallas_src>
import functools

import jax
import jax.numpy as jnp
from jax.experimental import pallas as pl
from jax.experimental.pallas import tpu as pltpu


def _attn_kernel(q_ref, k_ref, v_ref, u_ref, rr_ref, o_ref, *, dropout_p):
    q = q_ref[...]          # (S, D)
    k = k_ref[...]          # (T, D)
    v = v_ref[...]          # (T, Dv)
    u = u_ref[...]          # (S, T)  dropout uniforms in [0, 1)
    rr = rr_ref[...]        # (S, 1)  per-row uniform in [0, 1)
    D = q.shape[-1]

    # Q @ K^T on the MXU, contracting the last dims of both operands.
    scores = jax.lax.dot_general(
        q, k,
        dimension_numbers=(((1,), (1,)), ((), ())),
        preferred_element_type=jnp.float32,
    )

    # Fused constant: divide by scale_factor (= D**-0.5) and dropout rescale.
    c = jnp.float32((float(D) ** 0.5) / (1.0 - dropout_p))
    dropped = jnp.where(u >= jnp.float32(dropout_p), scores * c, jnp.float32(0.0))

    # drop_rows_or_cols: r = floor(t * rand(S,1)); t * (r / r.sum())  (global sum).
    r = jnp.floor(dropped * rr)
    r_sum = jnp.sum(r, keepdims=True)          # (1, 1): avoid rank-0 relayout

    out = jnp.dot(dropped * r, v, preferred_element_type=jnp.float32)
    # NOTE: r_sum == 0 yields inf/NaN — this mirrors the PyTorch reference, so
    # no guard is added.
    o_ref[...] = out / r_sum


@functools.partial(jax.jit, static_argnames=("dropout_p",))
def _attention(query, key, value, u, rr, *, dropout_p=0.1):
    S, _ = query.shape
    Dv = value.shape[-1]
    vmem = pl.BlockSpec(memory_space=pltpu.MemorySpace.VMEM)
    kernel = functools.partial(_attn_kernel, dropout_p=float(dropout_p))
    # Single grid point: every operand (a few KiB) fits in VMEM; the only lever
    # at this size is overhead reduction (jit caching, fewer wrapper kernels).
    return pl.pallas_call(
        kernel,
        out_shape=jax.ShapeDtypeStruct((S, Dv), jnp.float32),
        in_specs=[vmem, vmem, vmem, vmem, vmem],
        out_specs=vmem,
    )(query, key, value, u, rr)


@functools.partial(jax.jit, static_argnames=("dropout_p",))
def _forward_impl(query, key, value, rng_key, *, dropout_p=0.1):
    ku, kr = jax.random.split(rng_key)
    S = query.shape[0]
    T = key.shape[0]
    u = jax.random.uniform(ku, (S, T), dtype=jnp.float32)
    rr = jax.random.uniform(kr, (S, 1), dtype=jnp.float32)
    return _attention(query, key, value, u, rr, dropout_p=dropout_p)


def model_forward(x, query, key, value, rng_key, dropout_p=0.1):
    # `x` is unused by the reference forward; kept for signature parity.
    del x
    return _forward_impl(query, key, value, rng_key, dropout_p=dropout_p)
    # TODO(synk): if this module is ever invoked per-batch/per-head, fuse all
    # invocations into ONE pallas_call with a leading "parallel" grid axis
    # (per-program seeds / per-program uniform slices) and stack heads so the
    # output last dim is a multiple of 128 (lane-dense stores; shards across
    # the 2 TensorCores on v7x).


if __name__ == "__main__":
    # Small shapes consistent with the module: seq=8, hidden=32.
    S, T, D, Dv = 8, 8, 32, 32
    dropout_p = 0.1

    root = jax.random.PRNGKey(0)
    kq, kk, kv, kx, kd = jax.random.split(root, 5)

    # Deterministic "parameters" (the module stores Q/K/V as nn.Parameter).
    query = jax.random.normal(kq, (S, D), dtype=jnp.float32)
    key = jax.random.normal(kk, (T, D), dtype=jnp.float32)
    value = jax.random.normal(kv, (T, Dv), dtype=jnp.float32)

    # Unused input x (forward ignores it).
    x = jax.random.normal(kx, (S, D), dtype=jnp.float32)

    # Full forward path (RNG drawn inside the jitted wrapper).
    out = jax.block_until_ready(model_forward(x, query, key, value, kd, dropout_p))
    assert out.shape == (S, Dv)

    # Cross-check against a pure-JAX reference using explicitly supplied
    # uniforms (the exact same ones _forward_impl generates from `kd`).
    ku, kr = jax.random.split(kd)
    u = jax.random.uniform(ku, (S, T), dtype=jnp.float32)
    rr = jax.random.uniform(kr, (S, 1), dtype=jnp.float32)
    out_k = jax.block_until_ready(
        _attention(query, key, value, u, rr, dropout_p=dropout_p))

    hp = jax.lax.Precision.HIGHEST
    scores = jax.lax.dot_general(query, key, (((1,), (1,)), ((), ())),
                                 precision=hp, preferred_element_type=jnp.float32)
    scale_factor = float(D) ** (-0.5)
    dropped = jnp.where(u >= jnp.float32(dropout_p),
                        (scores / scale_factor) / (1.0 - dropout_p), 0.0)
    r = jnp.floor(dropped * rr)
    r_sum = float(jnp.sum(r))
    if r_sum != 0.0:  # degenerate case would be inf/NaN in both (reference semantics)
        ref = jnp.matmul(dropped * (r / jnp.sum(r)), value, precision=hp)
        err = float(jnp.max(jnp.abs(out_k - ref)))
        scale = max(1.0, float(jnp.max(jnp.abs(ref))))
        assert err <= 1e-4 * scale, f"kernel/reference mismatch: max abs err {err}"

    print("KERNEL_OK")
</pallas_src>

<mosaic_0001>
module attributes {stable_mosaic.version = 11 : i64} {
  func.func @_attn_kernel(%arg0: memref<8x32xf32, #tpu.memory_space<vmem>>, %arg1: memref<8x32xf32, #tpu.memory_space<vmem>>, %arg2: memref<8x32xf32, #tpu.memory_space<vmem>>, %arg3: memref<8x8xf32, #tpu.memory_space<vmem>>, %arg4: memref<8x1xf32, #tpu.memory_space<vmem>>, %arg5: memref<8x32xf32, #tpu.memory_space<vmem>>) attributes {dimension_semantics = [], scalar_prefetch = 0 : i64, scratch_operands = 0 : i64, tpu.core_type = #tpu.core_type<tc>} {
    %c0 = arith.constant 0 : index
    %c0_0 = arith.constant 0 : index
    %0 = vector.load %arg0[%c0, %c0_0] : memref<8x32xf32, #tpu.memory_space<vmem>>, vector<8x32xf32>
    %c0_1 = arith.constant 0 : index
    %c0_2 = arith.constant 0 : index
    %1 = vector.load %arg1[%c0_1, %c0_2] : memref<8x32xf32, #tpu.memory_space<vmem>>, vector<8x32xf32>
    %c0_3 = arith.constant 0 : index
    %c0_4 = arith.constant 0 : index
    %2 = vector.load %arg2[%c0_3, %c0_4] : memref<8x32xf32, #tpu.memory_space<vmem>>, vector<8x32xf32>
    %c0_5 = arith.constant 0 : index
    %c0_6 = arith.constant 0 : index
    %3 = vector.load %arg3[%c0_5, %c0_6] : memref<8x8xf32, #tpu.memory_space<vmem>>, vector<8x8xf32>
    %c0_7 = arith.constant 0 : index
    %c0_8 = arith.constant 0 : index
    %4 = vector.load %arg4[%c0_7, %c0_8] : memref<8x1xf32, #tpu.memory_space<vmem>>, vector<8x1xf32>
    %cst = arith.constant dense<0.000000e+00> : vector<8x8xf32>
    %5 = tpu.matmul %0, %1, %cst {dimension_numbers = #tpu.dot_dimension_numbers<[1], [1], [0], [0], [0, 0, 1, 0], [], []>} : vector<8x32xf32>, vector<8x32xf32>, vector<8x8xf32> -> vector<8x8xf32>
    %cst_9 = arith.constant 1.000000e-01 : f32
    %6 = vector.broadcast %cst_9 : f32 to vector<8x8xf32>
    %7 = arith.cmpf oge, %3, %6 : vector<8x8xf32>
    %cst_10 = arith.constant 6.28539371 : f32
    %8 = vector.broadcast %cst_10 : f32 to vector<8x8xf32>
    %9 = arith.mulf %5, %8 : vector<8x8xf32>
    %cst_11 = arith.constant 0.000000e+00 : f32
    %10 = vector.broadcast %cst_11 : f32 to vector<8x8xf32>
    %11 = arith.select %7, %9, %10 : vector<8x8xi1>, vector<8x8xf32>
    %12 = vector.broadcast %4 : vector<8x1xf32> to vector<8x8xf32>
    %13 = arith.mulf %11, %12 : vector<8x8xf32>
    %14 = math.floor %13 : vector<8x8xf32>
    %15 = vector.shape_cast %14 : vector<8x8xf32> to vector<1x8x8xf32>
    %cst_12 = arith.constant dense<0.000000e+00> : vector<1xf32>
    %16 = vector.multi_reduction <add>, %15, %cst_12 [1, 2] : vector<1x8x8xf32> to vector<1xf32>
    %17 = vector.shape_cast %16 : vector<1xf32> to vector<1x1x1xf32>
    %18 = vector.extract %17[0, 0, 0] : f32 from vector<1x1x1xf32>
    %19 = vector.broadcast %18 : f32 to vector<1x1xf32>
    %20 = arith.mulf %11, %14 : vector<8x8xf32>
    %cst_13 = arith.constant dense<0.000000e+00> : vector<8x32xf32>
    %21 = tpu.matmul %20, %2, %cst_13 {dimension_numbers = #tpu.dot_dimension_numbers<[1], [0], [0], [1], [0, 0, 1, 1], [], []>} : vector<8x8xf32>, vector<8x32xf32>, vector<8x32xf32> -> vector<8x32xf32>
    %22 = vector.broadcast %19 : vector<1x1xf32> to vector<8x32xf32>
    %23 = arith.divf %21, %22 : vector<8x32xf32>
    %c0_14 = arith.constant 0 : index
    %c0_15 = arith.constant 0 : index
    %24 = vector.load %arg5[%c0_14, %c0_15] : memref<8x32xf32, #tpu.memory_space<vmem>>, vector<8x32xf32>
    tpu.vector_store %arg5[%c0_14, %c0_15], %23 {strides = array<i32>} : memref<8x32xf32, #tpu.memory_space<vmem>>, vector<8x32xf32>,
    return
  }
}

</mosaic_0001>

<bundles_post_ra>
// kernel: _attention.1
= control target key start
LH: loop header
LB: loop body
LE: loop exit
PB: predicated region body
PF: predicated region fallthrough
CT: control target
= control target key end

     0   :  { %10 = vsyncpa [#allocation3], 0  ;;  %s426_s0 = inlined_call_operand.vmem [shape: f32[8,32], index: 0, kind: input, shape index: {}]   ;;  %s427_s1 = inlined_call_operand.hbm [shape: f32[8,32], index: 1, kind: input, shape index: {}]   ;;  %s428_s2 = inlined_call_operand.vmem [shape: f32[8,32], index: 2, kind: input, shape index: {}]   ;;  %s429_s3 = inlined_call_operand.hbm [shape: f32[8,8], index: 3, kind: input, shape index: {}]   ;;  %s430_s4 = inlined_call_operand.vmem [shape: f32[8,1], index: 4, kind: input, shape index: {}]   ;;  %s431_s5 = inlined_call_operand.hbm [shape: f32[8,32], index: 5, kind: output, shape index: {}]  }
   0x1   :  { %11 = vsyncpa [#allocation6], 0 }
   0x2   :  { %12 = vsyncpa [#allocation4], 0  ;;  %s342_s18 = smov [#allocation2]   ;;  %s343_s20 = smov [#allocation5]  }
   0x3   :  { %s21_s19 = sshll.u32 %s342_s18, 4  ;;  %s33_s21 = sshll.u32 %s343_s20, 4  ;;  %s22_s19 = int_to_ptr.vmem [resolvable:$true] %s21_s19  ;;  %s34_s21 = int_to_ptr.vmem [resolvable:$true] %s33_s21 }
   0x4   :  { %s270_s24 = scalar_lea.hbm %s427_s1, 128 }
   0x5   :  { %p271_p0 = scmp.ne.s32.totalorder %s427_s1, %s270_s24  ;;  %p274_p1 = scmp.lt.u32.totalorder %s270_s24, %s427_s1 }
   0x7   :  { %p276_p2 = pnand %p274_p1, %p271_p0 }
   0x9   :  { %279 = shalt.err (!%p276_p2)
}
   0xa   :  { %s280_s29 = scalar_lea.vmem %s22_s19, 128  ;;  %p285_p4 = scmp.lt.s32.totalorder %s22_s19, %s22_s19 }
   0xb   :  { %p281_p3 = scmp.ne.s32.totalorder %s22_s19, %s280_s29  ;;  %p286_p5 = scmp.lt.s32.totalorder %s280_s29, %s280_s29 }
   0xd   :  { %p287_p6 = por %p286_p5, %p285_p4 }
   0xf   :  { %p288_p7 = pnand %p287_p6, %p281_p3 }
  0x11   :  { %291 = shalt.err (!%p288_p7)
}
  0x12   :  { %24 = dma.hbm_to_vmem [thread:$0]  %s427_s1, 128, %s22_s19, [#allocation3]  }
  0x13   :  { %s292_s9 = scalar_lea.hbm %s429_s3, 128 }
  0x14   :  { %p293_p8 = scmp.ne.s32.totalorder %s429_s3, %s292_s9  ;;  %p296_p9 = scmp.lt.u32.totalorder %s292_s9, %s429_s3 }
  0x16   :  { %p298_p10 = pnand %p296_p9, %p293_p8 }
  0x18   :  { %301 = shalt.err (!%p298_p10)
}
  0x19   :  { %s302_s14 = scalar_lea.vmem %s34_s21, 128  ;;  %p307_p12 = scmp.lt.s32.totalorder %s34_s21, %s34_s21 }
  0x1a   :  { %p303_p11 = scmp.ne.s32.totalorder %s34_s21, %s302_s14  ;;  %p308_p13 = scmp.lt.s32.totalorder %s302_s14, %s302_s14 }
  0x1c   :  { %p309_p0 = por %p308_p13, %p307_p12 }
  0x1e   :  { %p310_p1 = pnand %p309_p0, %p303_p11 }
  0x20   :  { %313 = shalt.err (!%p310_p1)
}
  0x21   :  { %36 = dma.hbm_to_vmem [thread:$0]  %s429_s3, 128, %s34_s21, [#allocation6]  }
  0x22   :  { %336 = dma.done.wait [#allocation3], 128  }
  0x23   :  { %337 = vsyncadd [#allocation3], 4294967168 }
  0x24   :  { %338 = dma.done.wait [#allocation6], 128  }
  0x25   :  { %339 = vsyncadd [#allocation6], 4294967168  ;;  %v344_v0 = vmov 0.0   ;;  %vm345_vm0 = vmmov 0   ;;  %v346_v1 = vmov 0   ;;  %vm50_vm1 = vcmask 261120  }
  0x26   :  { %249 = vmatprep.subr.mxu0 %v344_v0  ;;  %251 = vmatprep.mubr.msk.f32.mxu0 %vm345_vm0, %v344_v0  ;;  %v46_v2 = vld [vmem:[#allocation2] sm:$0xff]  ;;  %v48_v6 = vld [vmem:[#allocation5] sm:$0xff]  ;;  %vm137_vm3 = vcmask 64512  }
  0x27   :  { %267 = vset.pattern.permute.xlu0 %v346_v1  ;;  %254 = vmatprep.subr.mxu1 %v344_v0  ;;  %v49_v3 = vld [vmem:[%s430_s4] sm:$0xff]  ;;  %vm127_vm2 = vcmp.ge.f32.partialorder %v48_v6, 0.1 }
  0x28   :  { %256 = vmatprep.mubr.msk.f32.mxu1 %vm345_vm0, %v344_v0  ;;  %250 = vmatpush3.xpose.msk.msra.mxu0 %vm50_vm1, %v46_v2  ;;  %v45_v4 = vld [vmem:[%s426_s0] sm:$0xff] }
  0x29   :  { %132 = vperm.xlu0 %267, %v49_v3   ;;  %v47_v5 = vld [vmem:[%s428_s2] sm:$0xff]  ;;  %s347_s2 = smov [#allocation7]  }
  0x2a   :  { %255 = vmatpush3.msra.mxu1 %v47_v5  ;;  %s232_s4 = sshll.u32 %s347_s2, 4  ;;  %s233_s4 = int_to_ptr.vmem [resolvable:$true] %s232_s4 }
  0x2b   :  { %252 = vmatmul.mubr.msk.f32.vlgmr.msra.gmra.mrb[0].mxu0 %vm50_vm1, %v45_v4  ;;  %s314_s21 = scalar_lea.vmem %s233_s4, 128  ;;  %p319_p3 = scmp.lt.s32.totalorder %s233_s4, %s233_s4 }
  0x2c   :  { %p315_p2 = scmp.ne.s32.totalorder %s233_s4, %s314_s21  ;;  %p320_p4 = scmp.lt.s32.totalorder %s314_s21, %s314_s21 }
  0x2e   :  { %p321_p5 = por %p320_p4, %p319_p3 }
  0x30   :  { %p322_p6 = pnand %p321_p5, %p315_p2 }
  0xa8   :  { %v133_v10 = vpop.permute.xlu0 %132 }
  0xfe   :  { %v123_v7 = vpop.f32.mrb[0].mxu0 }
  0xff   :  { %v128_v8 = vmul.f32 6.2853937, %v123_v7  ;;  %v253_v9 = vpop.f32.mrb[1].mxu0 }
 0x101   :  { %v129_v11 = vsel %vm127_vm2, %v128_v8, 0.0 }
 0x102   :  { %v135_v12 = vmul.f32 %v133_v10, %v129_v11 }
 0x104   :  { %v136_v13 = vfloor.f32 %v135_v12 }
 0x106   :  { %v148_v14 = vmul.f32 %v136_v13, %v129_v11  ;;  %v138_v15 = vsel %vm137_vm3, %v136_v13, 0.0 }
 0x107   :  { %139 = vadd.xlane.f32.xlu0 %v138_v15 }
 0x108   :  { %257 = vmatmul.mubr.msk.f32.vlgmr.msra.gmra.mrb[0].mxu1 %vm137_vm3, %v148_v14 }
 0x194   :  { %v140_v16 = vpop.xlane.xlu0 %139 }
 0x195   :  { %v141_v17 = vrot.slane %v140_v16, 4 }
 0x197   :  { %v142_v18 = vadd.f32 %v141_v17, %v140_v16 }
 0x199   :  { %v143_v19 = vrot.slane %v142_v18, 2 }
 0x19b   :  { %v144_v20 = vadd.f32 %v143_v19, %v142_v18 }
 0x19d   :  { %v145_v21 = vrot.slane %v144_v20, 1 }
 0x19f   :  { %v146_v22 = vadd.f32 %v145_v21, %v144_v20 }
 0x1a1   :  { %259 = vpush %v146_v22 }
 0x1d2   :  { %s260_s0 = spop %259 }
 0x1d3   :  { %v222_v23 = vstv %s260_s0 }
 0x1d4   :  { %268 = vrcp.f32 %v222_v23 }
 0x1db   :  { %v218_v24 = vpop.f32.mrb[0].mxu1 }
 0x1dc   :  { %v258_v25 = vpop.f32.mrb[1].mxu1 }
 0x1de   :  { %v269_v26 = vpop.eup %268 }
 0x1df   :  { %v224_v27 = vmul.f32 %v269_v26, %v218_v24 }
 0x1e1   :  { %225 = vst.msk [vmem:[#allocation7] sm:$0xff] %vm50_vm1, %v224_v27 }
 0x1e2   :  { %325 = shalt.err (!%p322_p6)
}
 0x1e3   :  { %s326_s24 = scalar_lea.hbm %s431_s5, 128 }
 0x1e4   :  { %p327_p7 = scmp.ne.s32.totalorder %s431_s5, %s326_s24  ;;  %p330_p8 = scmp.lt.u32.totalorder %s326_s24, %s431_s5 }
 0x1e6   :  { %p332_p9 = pnand %p330_p8, %p327_p7 }
 0x1e8   :  { %335 = shalt.err (!%p332_p9)
}
 0x1e9   :  { %235 = dma.vmem_to_hbm [thread:$0]  %s233_s4, 128, %s431_s5, [#allocation4]  }
 0x1ea   :  { %340 = dma.done.wait [#allocation4], 128  }
 0x1eb   :  { %341 = vsyncadd [#allocation4], 4294967168 }
 0x1ec   :  { %239 = vsyncpa [#allocation3], 1 }
 0x1ed   :  { %240 = vsyncpa [#allocation6], 1 }
 0x1ee   :  { %241 = vsyncpa [#allocation4], 1 }

</bundles_post_ra>
